<compile_context>
chip_gen: v5e
topology: v5e:2x2
jax: 0.10.0
libtpu: 0.0.40
codegen_flags: <defaults>
</compile_context>

<pallas_src>
import functools

import jax
import jax.numpy as jnp
from jax import lax
from jax.experimental import pallas as pl
from jax.experimental.pallas import tpu as pltpu


def _keep_mask(shape, p, seed, row_offset, col_offset, total_cols):
    """Keep/drop mask via a cheap (1 mixing round) counter-based int32 hash.

    Global (row, col) offsets make the stream independent of the tiling, so results
    do not depend on block_rows / block_k / grid order ("parallel"-safe).
    """
    i = lax.broadcasted_iota(jnp.int32, shape, 0) + row_offset
    j = lax.broadcasted_iota(jnp.int32, shape, 1) + col_offset
    h = i * jnp.int32(total_cols) + j + seed * jnp.int32(0x27D4EB2F)
    # one xorshift-multiply round: dropout only needs a keep/drop bit (VALU budget)
    h = (h ^ (h >> 15)) * jnp.int32(0x2C1B3C6D)
    h = h ^ (h >> 13)
    bits24 = h & jnp.int32(0x00FFFFFF)                 # pseudo-uniform in [0, 2^24)
    thresh = jnp.int32(int(p * float(1 << 24)))        # drop if bits24 < p * 2^24
    return bits24 >= thresh


def _ffn_kernel(seed_ref, x_ref, w1t_ref, b1_ref, w2t_ref, b2_ref, o_ref, acc_ref, *,
                p, training, block_rows, block_k, hidden_total, dim_total):
    use_dropout = training and p > 0.0
    k = pl.program_id(1)
    nk = pl.num_programs(1)
    row0 = pl.program_id(0) * block_rows

    @pl.when(k == 0)
    def _():
        acc_ref[...] = jnp.zeros_like(acc_ref)

    # --- Linear1 chunk (dim -> block_k) on the MXU: bf16 operands, f32 accumulate ---
    h = jnp.dot(x_ref[...], w1t_ref[...],
                preferred_element_type=jnp.float32)          # (TM, TK)
    h = h + b1_ref[...]                                      # (1, TK) broadcast

    # --- GELU ---
    # TODO(synk): PyTorch nn.GELU defaults to the exact (erf) form; tanh approximation used here.
    h = jax.nn.gelu(h, approximate=True)

    if use_dropout:
        seed0 = seed_ref[0]
        col0 = k * block_k
        # dropout stream #1 (scale folded into W2^T in the wrapper)
        keep1 = _keep_mask(h.shape, p, seed0 * 2, row0, col0, hidden_total)
        h = jnp.where(keep1, h, 0.0)

    # --- Linear2 chunk (block_k -> dim): accumulate into VMEM scratch ---
    acc_ref[...] += jnp.dot(h.astype(jnp.bfloat16), w2t_ref[...],
                            preferred_element_type=jnp.float32)   # (TM, N)

    @pl.when(k == nk - 1)
    def _():
        y = acc_ref[...] + b2_ref[...]                       # (1, N) broadcast
        if use_dropout:
            # dropout stream #2 (scale folded into b2 / W2^T in the wrapper)
            keep2 = _keep_mask(y.shape, p, seed_ref[0] * 2 + 1, row0, 0, dim_total)
            y = jnp.where(keep2, y, 0.0)
        o_ref[...] = y.astype(o_ref.dtype)


def feedforward(x, w1, b1, w2, b2, *, dropout_rate=0.0, training=False, seed=0,
                block_rows=None, block_k=None):
    """Pallas TPU implementation of FeedForward.forward.

    x:  (B, C, H, W, D);  dim = H*W*D
    w1: (hidden, dim),  b1: (hidden,)    -- nn.Linear(dim, hidden)
    w2: (dim, hidden),  b2: (dim,)       -- nn.Linear(hidden, dim)
    """
    B, C, H, W, D = x.shape
    N = H * W * D
    Hd = w1.shape[0]
    assert w1.shape == (Hd, N) and b1.shape == (Hd,)
    assert w2.shape == (N, Hd) and b2.shape == (N,)
    assert 0.0 <= dropout_rate < 1.0, "dropout_rate must be in [0, 1)"

    M = B * C

    # --- Row tile: multiple of 16 (bf16 sublane tile), capped at 256, and >= 2 row
    # steps when M allows so ("parallel",) can shard across both TCs on v7x. ---
    if block_rows is None:
        block_rows = 16
        for cand in (256, 128, 64, 32, 16):
            if M >= 2 * cand:
                block_rows = cand
                break
    block_rows = int(block_rows)
    assert block_rows % 16 == 0, "block_rows must be a multiple of 16 (bf16 tiling)"
    M_pad = ((M + block_rows - 1) // block_rows) * block_rows

    # --- Hidden/K tile: prefer >= 256-wide contraction chunks (fills the 256x256 MXU
    # on v6e/v7x); fall back to the whole hidden dim if it has no nice divisor. ---
    if block_k is None:
        block_k = Hd
        for cand in (512, 256, 128):
            if Hd % cand == 0:
                block_k = cand
                break
    block_k = int(block_k)
    assert Hd % block_k == 0, "block_k must divide hidden_dim"

    use_dropout = training and dropout_rate > 0.0
    keep_prob = 1.0 - float(dropout_rate)

    # --- bf16 inputs / pre-transposed bf16 weights (MXU-friendly, halves HBM I/O). ---
    x2 = x.reshape(M, N).astype(jnp.bfloat16)
    if M_pad != M:
        x2 = jnp.pad(x2, ((0, M_pad - M), (0, 0)))

    # Fold the two inverted-dropout scales into W2^T / b2 (removes two full-tile
    # f32 multiplies per step inside the kernel; MXU work unchanged).
    w2_eff = w2 / (keep_prob * keep_prob) if use_dropout else w2
    b2_eff = b2 / keep_prob if use_dropout else b2

    w1t = jnp.asarray(w1.T, dtype=jnp.bfloat16)        # (N, Hd)
    w2t = jnp.asarray(w2_eff.T, dtype=jnp.bfloat16)    # (Hd, N)
    b1r = b1.reshape(1, Hd).astype(jnp.float32)
    b2r = b2_eff.reshape(1, N).astype(jnp.float32)
    seed_arr = jnp.asarray([seed], dtype=jnp.int32)    # scalar-prefetch -> SMEM

    # --- Explicit VMEM budget (blocks + weight chunks + accumulator + headroom). ---
    bytes_needed = (
        2 * block_rows * N * 2        # x block, bf16, double-buffered
        + 2 * N * block_k * 2         # W1^T chunk, bf16, double-buffered
        + 2 * block_k * 4             # b1 chunk
        + 2 * block_k * N * 2         # W2^T chunk, bf16, double-buffered
        + 2 * N * 4                   # b2
        + 2 * block_rows * N * 4      # out block, f32, double-buffered
        + block_rows * N * 4          # accumulator scratch
    )
    vmem_limit = max(32 << 20, min(64 << 20, int(1.5 * bytes_needed) + (4 << 20)))

    kernel = functools.partial(
        _ffn_kernel, p=float(dropout_rate), training=bool(training),
        block_rows=block_rows, block_k=block_k, hidden_total=Hd, dim_total=N)

    out2 = pl.pallas_call(
        kernel,
        out_shape=jax.ShapeDtypeStruct((M_pad, N), x.dtype),
        grid_spec=pltpu.PrefetchScalarGridSpec(
            num_scalar_prefetch=1,                      # dropout seed lands in SMEM
            grid=(M_pad // block_rows, Hd // block_k),  # rows (parallel), K (reduction, last)
            in_specs=[
                pl.BlockSpec((block_rows, N), lambda m, k, s: (m, 0)),   # x rows (bf16)
                pl.BlockSpec((N, block_k), lambda m, k, s: (0, k)),      # W1^T chunk
                pl.BlockSpec((1, block_k), lambda m, k, s: (0, k)),      # b1 chunk
                pl.BlockSpec((block_k, N), lambda m, k, s: (k, 0)),      # W2^T chunk
                pl.BlockSpec((1, N), lambda m, k, s: (0, 0)),            # b2
            ],
            out_specs=pl.BlockSpec((block_rows, N), lambda m, k, s: (m, 0)),
            scratch_shapes=[pltpu.VMEM((block_rows, N), jnp.float32)],   # K accumulator
        ),
        # Row blocks are fully independent (counter-based dropout hash, no carried
        # state) -> "parallel"; the hidden/K axis carries the accumulator -> "arbitrary".
        compiler_params=pltpu.CompilerParams(
            dimension_semantics=("parallel", "arbitrary"),
            vmem_limit_bytes=vmem_limit),
    )(seed_arr, x2, w1t, b1r, w2t, b2r)

    return out2[:M].reshape(B, C, H, W, D)


def ref_feedforward_eval(x, w1, b1, w2, b2):
    """Pure-JAX reference, eval mode (dropout = identity). Matches the kernel's
    bf16-operand / f32-accumulate matmuls and tanh-approx GELU."""
    B, C, H, W, D = x.shape
    N = H * W * D
    x2 = x.reshape(B * C, N)
    h = jnp.einsum("mn,hn->mh", x2.astype(jnp.bfloat16), w1.astype(jnp.bfloat16),
                   preferred_element_type=jnp.float32) + b1[None, :]
    h = jax.nn.gelu(h, approximate=True)
    y = jnp.einsum("mh,nh->mn", h.astype(jnp.bfloat16), w2.astype(jnp.bfloat16),
                   preferred_element_type=jnp.float32) + b2[None, :]
    return y.reshape(B, C, H, W, D).astype(x.dtype)


if __name__ == "__main__":
    key = jax.random.PRNGKey(0)
    k_x, k_w1, k_b1, k_w2, k_b2 = jax.random.split(key, 5)

    B, C, H, W, D = 2, 16, 4, 4, 8
    dim = H * W * D            # 128: the nn.Linear feature size after the view
    hidden_dim = 512
    dropout_rate = 0.1

    x = jax.random.normal(k_x, (B, C, H, W, D), jnp.float32)
    w1 = jax.random.normal(k_w1, (hidden_dim, dim), jnp.float32) / jnp.sqrt(dim)
    b1 = 0.1 * jax.random.normal(k_b1, (hidden_dim,), jnp.float32)
    w2 = jax.random.normal(k_w2, (dim, hidden_dim), jnp.float32) / jnp.sqrt(hidden_dim)
    b2 = 0.1 * jax.random.normal(k_b2, (dim,), jnp.float32)

    ref = ref_feedforward_eval(x, w1, b1, w2, b2)

    # Eval mode, auto tiling (block_rows=16 -> 2 row steps; block_k=512 -> 1 K step).
    out_eval = feedforward(x, w1, b1, w2, b2, dropout_rate=dropout_rate, training=False)
    jax.block_until_ready(out_eval)
    assert out_eval.shape == x.shape and out_eval.dtype == x.dtype
    assert jnp.allclose(out_eval, ref, atol=1e-2, rtol=1e-2), "kernel/reference mismatch"

    # Eval mode with explicit smaller tiles: exercises the multi-step K accumulator
    # (2 row steps x 4 K steps) and the pl.when init/finalize path.
    out_eval_tiled = feedforward(x, w1, b1, w2, b2, dropout_rate=dropout_rate,
                                 training=False, block_rows=16, block_k=128)
    jax.block_until_ready(out_eval_tiled)
    assert jnp.allclose(out_eval_tiled, ref, atol=1e-2, rtol=1e-2), "tiled kernel mismatch"

    # Training mode: hash-based inverted dropout with scales folded into W2/b2
    # (stochastic; sanity checks only).
    out_train = feedforward(x, w1, b1, w2, b2, dropout_rate=dropout_rate,
                            training=True, seed=1234, block_k=256)
    jax.block_until_ready(out_train)
    assert out_train.shape == x.shape and out_train.dtype == x.dtype
    assert bool(jnp.all(jnp.isfinite(out_train)))
    zero_frac = float(jnp.mean(out_train == 0.0))
    assert 0.02 < zero_frac < 0.30, f"dropout zero fraction looks wrong: {zero_frac}"

    print("KERNEL_OK")
</pallas_src>

<mosaic_0001>
module attributes {stable_mosaic.version = 11 : i64} {
  func.func @_ffn_kernel(%arg0: i32, %arg1: i32, %arg2: memref<1xi32, #tpu.memory_space<smem>>, %arg3: memref<16x128xbf16, #tpu.memory_space<vmem>>, %arg4: memref<128x512xbf16, #tpu.memory_space<vmem>>, %arg5: memref<1x512xf32, #tpu.memory_space<vmem>>, %arg6: memref<512x128xbf16, #tpu.memory_space<vmem>>, %arg7: memref<1x128xf32, #tpu.memory_space<vmem>>, %arg8: memref<16x128xf32, #tpu.memory_space<vmem>>, %arg9: memref<16x128xf32, #tpu.memory_space<vmem>>) attributes {dimension_semantics = [#tpu.dimension_semantics<parallel>, #tpu.dimension_semantics<arbitrary>], iteration_bounds = array<i64: 2, 1>, scalar_prefetch = 1 : i64, scratch_operands = 1 : i64, tpu.core_type = #tpu.core_type<tc>, window_params = [{transform_indices = @transform_0, window_bounds = array<i64: 16, 128>}, {transform_indices = @transform_1, window_bounds = array<i64: 128, 512>}, {transform_indices = @transform_2, window_bounds = array<i64: 1, 512>}, {transform_indices = @transform_3, window_bounds = array<i64: 512, 128>}, {pipeline_mode = #tpu.pipeline_mode<synchronous>, transform_indices = @transform_4, window_bounds = array<i64: 1, 128>}, {transform_indices = @transform_5, window_bounds = array<i64: 16, 128>}]} {
    %c0_i32 = arith.constant 0 : i32
    %0 = arith.cmpi eq, %arg1, %c0_i32 : i32
    %1 = arith.extui %0 : i1 to i32
    %c0_i32_0 = arith.constant 0 : i32
    %2 = arith.cmpi ne, %1, %c0_i32_0 : i32
    scf.if %2 {
      %cst_19 = arith.constant 0.000000e+00 : f32
      %31 = vector.broadcast %cst_19 : f32 to vector<16x128xf32>
      %c0_20 = arith.constant 0 : index
      %c0_21 = arith.constant 0 : index
      %32 = vector.load %arg9[%c0_20, %c0_21] : memref<16x128xf32, #tpu.memory_space<vmem>>, vector<16x128xf32>
      tpu.vector_store %arg9[%c0_20, %c0_21], %31 {strides = array<i32>} : memref<16x128xf32, #tpu.memory_space<vmem>>, vector<16x128xf32>,
    } else {
    }
    %c0 = arith.constant 0 : index
    %c0_1 = arith.constant 0 : index
    %3 = vector.load %arg3[%c0, %c0_1] : memref<16x128xbf16, #tpu.memory_space<vmem>>, vector<16x128xbf16>
    %c0_2 = arith.constant 0 : index
    %c0_3 = arith.constant 0 : index
    %4 = vector.load %arg4[%c0_2, %c0_3] : memref<128x512xbf16, #tpu.memory_space<vmem>>, vector<128x512xbf16>
    %cst = arith.constant dense<0.000000e+00> : vector<16x512xf32>
    %5 = tpu.matmul %3, %4, %cst {dimension_numbers = #tpu.dot_dimension_numbers<[1], [0], [0], [1], [0, 0, 1, 1], [], []>} : vector<16x128xbf16>, vector<128x512xbf16>, vector<16x512xf32> -> vector<16x512xf32>
    %c0_4 = arith.constant 0 : index
    %c0_5 = arith.constant 0 : index
    %6 = vector.load %arg5[%c0_4, %c0_5] : memref<1x512xf32, #tpu.memory_space<vmem>>, vector<1x512xf32>
    %7 = vector.broadcast %6 : vector<1x512xf32> to vector<16x512xf32>
    %8 = arith.addf %5, %7 : vector<16x512xf32>
    %9 = arith.mulf %8, %8 : vector<16x512xf32>
    %10 = arith.mulf %8, %9 : vector<16x512xf32>
    %cst_6 = arith.constant 4.471500e-02 : f32
    %11 = vector.broadcast %cst_6 : f32 to vector<16x512xf32>
    %12 = arith.mulf %11, %10 : vector<16x512xf32>
    %13 = arith.addf %8, %12 : vector<16x512xf32>
    %cst_7 = arith.constant 0.797884583 : f32
    %14 = vector.broadcast %cst_7 : f32 to vector<16x512xf32>
    %15 = arith.mulf %14, %13 : vector<16x512xf32>
    %16 = math.tanh %15 : vector<16x512xf32>
    %cst_8 = arith.constant 1.000000e+00 : f32
    %17 = vector.broadcast %cst_8 : f32 to vector<16x512xf32>
    %18 = arith.addf %17, %16 : vector<16x512xf32>
    %cst_9 = arith.constant 5.000000e-01 : f32
    %19 = vector.broadcast %cst_9 : f32 to vector<16x512xf32>
    %20 = arith.mulf %19, %18 : vector<16x512xf32>
    %21 = arith.mulf %8, %20 : vector<16x512xf32>
    %c0_10 = arith.constant 0 : index
    %c0_11 = arith.constant 0 : index
    %22 = vector.load %arg9[%c0_10, %c0_11] : memref<16x128xf32, #tpu.memory_space<vmem>>, vector<16x128xf32>
    %23 = arith.truncf %21 : vector<16x512xf32> to vector<16x512xbf16>
    %c0_12 = arith.constant 0 : index
    %c0_13 = arith.constant 0 : index
    %24 = vector.load %arg6[%c0_12, %c0_13] : memref<512x128xbf16, #tpu.memory_space<vmem>>, vector<512x128xbf16>
    %cst_14 = arith.constant dense<0.000000e+00> : vector<16x128xf32>
    %25 = tpu.matmul %23, %24, %cst_14 {dimension_numbers = #tpu.dot_dimension_numbers<[1], [0], [0], [1], [0, 0, 1, 1], [], []>} : vector<16x512xbf16>, vector<512x128xbf16>, vector<16x128xf32> -> vector<16x128xf32>
    %26 = arith.addf %22, %25 : vector<16x128xf32>
    %c0_15 = arith.constant 0 : index
    %c0_16 = arith.constant 0 : index
    %27 = vector.load %arg9[%c0_15, %c0_16] : memref<16x128xf32, #tpu.memory_space<vmem>>, vector<16x128xf32>
    tpu.vector_store %arg9[%c0_15, %c0_16], %26 {strides = array<i32>} : memref<16x128xf32, #tpu.memory_space<vmem>>, vector<16x128xf32>,
    %c0_i32_17 = arith.constant 0 : i32
    %28 = arith.cmpi eq, %arg1, %c0_i32_17 : i32
    %29 = arith.extui %28 : i1 to i32
    %c0_i32_18 = arith.constant 0 : i32
    %30 = arith.cmpi ne, %29, %c0_i32_18 : i32
    scf.if %30 {
      %c0_19 = arith.constant 0 : index
      %c0_20 = arith.constant 0 : index
      %31 = vector.load %arg9[%c0_19, %c0_20] : memref<16x128xf32, #tpu.memory_space<vmem>>, vector<16x128xf32>
      %c0_21 = arith.constant 0 : index
      %c0_22 = arith.constant 0 : index
      %32 = vector.load %arg7[%c0_21, %c0_22] : memref<1x128xf32, #tpu.memory_space<vmem>>, vector<1x128xf32>
      %33 = vector.broadcast %32 : vector<1x128xf32> to vector<16x128xf32>
      %34 = arith.addf %31, %33 : vector<16x128xf32>
      %c0_23 = arith.constant 0 : index
      %c0_24 = arith.constant 0 : index
      %35 = vector.load %arg8[%c0_23, %c0_24] : memref<16x128xf32, #tpu.memory_space<vmem>>, vector<16x128xf32>
      tpu.vector_store %arg8[%c0_23, %c0_24], %34 {strides = array<i32>} : memref<16x128xf32, #tpu.memory_space<vmem>>, vector<16x128xf32>,
    } else {
    }
    return
  }
  func.func @transform_0(%arg0: i32, %arg1: i32, %arg2: memref<1xi32, #tpu.memory_space<smem>>) -> (i32, i32) {
    %c0_i32 = arith.constant 0 : i32
    %c0_i32_0 = arith.constant 0 : i32
    return %arg0, %c0_i32 : i32, i32
  }
  func.func @transform_1(%arg0: i32, %arg1: i32, %arg2: memref<1xi32, #tpu.memory_space<smem>>) -> (i32, i32) {
    %c0_i32 = arith.constant 0 : i32
    %c0_i32_0 = arith.constant 0 : i32
    return %c0_i32, %arg1 : i32, i32
  }
  func.func @transform_2(%arg0: i32, %arg1: i32, %arg2: memref<1xi32, #tpu.memory_space<smem>>) -> (i32, i32) {
    %c0_i32 = arith.constant 0 : i32
    %c0_i32_0 = arith.constant 0 : i32
    return %c0_i32, %arg1 : i32, i32
  }
  func.func @transform_3(%arg0: i32, %arg1: i32, %arg2: memref<1xi32, #tpu.memory_space<smem>>) -> (i32, i32) {
    %c0_i32 = arith.constant 0 : i32
    %c0_i32_0 = arith.constant 0 : i32
    return %arg1, %c0_i32 : i32, i32
  }
  func.func @transform_4(%arg0: i32, %arg1: i32, %arg2: memref<1xi32, #tpu.memory_space<smem>>) -> (i32, i32) {
    %c0_i32 = arith.constant 0 : i32
    %c0_i32_0 = arith.constant 0 : i32
    %c0_i32_1 = arith.constant 0 : i32
    return %c0_i32, %c0_i32_0 : i32, i32
  }
  func.func @transform_5(%arg0: i32, %arg1: i32, %arg2: memref<1xi32, #tpu.memory_space<smem>>) -> (i32, i32) {
    %c0_i32 = arith.constant 0 : i32
    %c0_i32_0 = arith.constant 0 : i32
    return %arg0, %c0_i32 : i32, i32
  }
}

</mosaic_0001>

<bundles_post_ra>
// kernel: tpu_custom_call.1
= control target key start
LH: loop header
LB: loop body
LE: loop exit
PB: predicated region body
PF: predicated region fallthrough
CT: control target
= control target key end

     0   :  { %s2098_s0 = inlined_call_operand.<no memory space> [shape: s32[1], index: 0, kind: input, shape index: {}]   ;;  %s2099_s1 = inlined_call_operand.hbm [shape: bf16[32,128], index: 1, kind: input, shape index: {}]   ;;  %s2100_s2 = inlined_call_operand.hbm [shape: bf16[128,512], index: 2, kind: input, shape index: {}]   ;;  %s2101_s3 = inlined_call_operand.hbm [shape: f32[1,512], index: 3, kind: input, shape index: {}]   ;;  %s2102_s4 = inlined_call_operand.hbm [shape: bf16[512,128], index: 4, kind: input, shape index: {}]   ;;  %s2103_s5 = inlined_call_operand.vmem [shape: f32[1,128], index: 5, kind: input, shape index: {}]   ;;  %s2104_s6 = inlined_call_operand.hbm [shape: f32[32,128], index: 6, kind: output, shape index: {}]  }
   0x1   :  { %2107 = sst [smem:[#allocation18_spill]] %s2100_s2 }
   0x2   :  { %2108 = sst [smem:[#allocation19_spill]] %s2101_s3 }
   0x3   :  { %2109 = sst [smem:[#allocation20_spill]] %s2102_s4 }
   0x4   :  { %12 = vsyncpa [#allocation6], 0 }
   0x5   :  { %14 = vsyncpa [#allocation6 + $0x1], 0 }
   0x6   :  { %15 = vsyncpa [#allocation9], 0 }
   0x7   :  { %16 = vsyncpa [#allocation12], 0 }
   0x8   :  { %17 = vsyncpa [#allocation7], 0 }
   0x9   :  { %19 = vsyncpa [#allocation7 + $0x1], 0  ;;  %s1866_s0 = smov 0   ;;  %s1868_s21 = smov 0  }
   0xa   :  { %s1870_s22 = smov 0   ;;  %s1872_s23 = smov 0  }
   0xb   :  { %s1874_s24 = smov 0   ;;  %s1876_s25 = smov 0  }
   0xc LB: > { %s1146_s26 = sadd.s32 4294967295, %s1820_s25   ;;  %s1147_s27 = sadd.s32 4294967294, %s1820_s25   ;;  %s1820_s25 = sphi %s1876_s25, %s25_s25   ;;  %s1816_s24 = sphi %s1874_s24, %s2127_s24   ;;  %s1812_s23 = sphi %s1872_s23, %s2126_s23   ;;  %s1808_s22 = sphi %s1870_s22, %s2125_s22   ;;  %s1804_s21 = sphi %s1868_s21, %s2124_s21   ;;  %s1800_s0 = sphi %s1866_s0, %s2123_s0  }
   0xd   : > { %p57_p0 = scmp.ne.s32.totalorder %s1804_s21, %s1800_s0  ;;  %p1900_p1 = scmp.eq.s32.totalorder %s1146_s26, 0 }
   0xe   : > { %p1904_p2 = scmp.eq.s32.totalorder %s1146_s26, 1  ;;  %p186_p3 = scmp.eq.s32.totalorder %s1147_s27, 1 }
   0xf   : > { %p1910_p4 = por %p1900_p1, %p57_p0  ;;  %p1148_p5 = scmp.ge.s32.totalorder %s1820_s25, 1 }
  0x10   : > { %p1915_p6 = por %p186_p3, %p57_p0  ;;  %p193_p7 = scmp.lt.s32.totalorder %s1820_s25, 3 }
  0x11   : > { %s2114_s2 = sld [smem:[#allocation18_spill]]  ;;  %s1822_s12 = smov [#allocation8]  }
  0x12   : > { %p1923_p8 = pnand %p1148_p5, %p193_p7  ;;  %s209_s13 = sshll.u32 %s1822_s12, 4  ;;  %s210_s13 = int_to_ptr.vmem [resolvable:$true] %s209_s13 }
  0x13   : > { %p1152_p11 = scmp.ge.s32.totalorder %s1820_s25, 2  ;;  %s2117_s3 = sld [smem:[#allocation19_spill]] }
  0x14   : > { %p1510_p9 = pneg %p1923_p8  ;;  %s1823_s18 = smov 256  }
  0x15   : > { %s1824_s19 = smov 16   ;;  %s1825_s20 = smov [#allocation10]  }
  0x16   : > { %p1931_p10 = pnand %p1510_p9, %p1900_p1  ;;  %s226_s26 = sshll.u32 %s1825_s20, 4  ;;  %s227_s26 = int_to_ptr.vmem [resolvable:$true] %s226_s26 }
  0x17   : > { %s207_s10 = sshll.u32 %s2114_s2, 4  ;;  %s2118_s4 = sld [smem:[#allocation20_spill]]  ;;  %s208_s10 = int_to_ptr.hbm [resolvable:$true] %s207_s10 }
  0x18   : > { %1513 = dma.hbm_to_vmem [thread:$0]  (!%p1931_p10), %s208_s10, 4096, %s210_s13, [#allocation9], %s1823_s18, %s1823_s18, %s1824_s19  }
  0x19   : > { %s224_s17 = sshll.u32 %s2117_s3, 4  ;;  %s1826_s12 = smov [#allocation11]   ;;  %s225_s17 = int_to_ptr.hbm [resolvable:$true] %s224_s17 }
  0x1a   : > { %1516 = dma.hbm_to_vmem [thread:$0]  (!%p1931_p10), %s225_s17, 64, %s227_s26, [#allocation9]  }
  0x1b   : > { %s240_s15 = sshll.u32 %s1826_s12, 4  ;;  %s2105_s16 = smov 64   ;;  %s241_s15 = int_to_ptr.vmem [resolvable:$true] %s240_s15 }
  0x1c   : > { %s2106_s10 = smov 4   ;;  %s44_s13 = sadd.s32 1, %s1808_s22 }
  0x1d   : > { %s238_s9 = sshll.u32 %s2118_s4, 4  ;;  %s37_s18 = sadd.s32 1, %s1816_s24  ;;  %s239_s9 = int_to_ptr.hbm [resolvable:$true] %s238_s9 }
  0x1e   : > { %1519 = dma.hbm_to_vmem [thread:$0]  (!%p1931_p10), %s239_s9, 4096, %s241_s15, [#allocation12], %s2105_s16, %s2105_s16, %s2106_s10  }
  0x1f   : > { %p51_p12 = scmp.ne.s32.totalorder %s1808_s22, %s1804_s21  ;;  %p39_p13 = scmp.ge.s32.totalorder %s37_s18, 2 }
  0x20   : > { %p52_p0 = scmp.eq.s32.totalorder %s1820_s25, 0  ;;  %p1531_p5 = scmp.lt.s32.totalorder %s1820_s25, 2 }
  0x21   : > { %p1958_p3 = por %p1904_p2, %p51_p12  ;;  %s2129_s18 = smov (%p39_p13, %s37_s18), 0 }
  0x22   : > { %p1965_p7 = por %p52_p0, %p51_p12  ;;  %s257_s19 = sand.u32 1, %s1808_s22  }
  0x23   : > { %s41_s20 = ssub.s32 %s1816_s24, %s2129_s18  ;;  %s1153_s26 = sshll.u32 %s257_s19, 3 }
  0x24   : > { %p42_p9 = scmp.eq.s32.totalorder %s41_s20, 0  ;;  %s1427_s27 = sshll.u32 %s1816_s24, 3 }
  0x25   : > { %s266_s12 = scalar_lea.hbm %s2099_s1, %s1427_s27  ;;  %s261_s15 = scalar_lea.vmem [#allocation5], %s1153_s26 }
  0x26   : > { %s1974_s29 = scalar_select %p42_p9, %s1808_s22, %s44_s13  }
  0x27   : > { %s269_s16 = sshll.u32 %s261_s15, 4  ;;  %s267_s10 = sshll.u32 %s266_s12, 4  ;;  %s270_s16 = int_to_ptr.vmem [resolvable:$true] %s269_s16  ;;  %s268_s10 = int_to_ptr.hbm [resolvable:$true] %s267_s10 }
  0x28   : > { %p1521_p2 = pnand %p1531_p5, %p1965_p7  ;;  %s258_s2 = scalar_lea.sflag [#allocation6], %s257_s19 }
  0x29   : > { %s2121_s3 = smov 4   ;;  %s2122_s4 = smov 64  }
  0x2a   : > { %1523 = dma.hbm_to_vmem [thread:$0]  (!%p1521_p2), %s268_s10, 128, %s270_s16, %s258_s2, %s2122_s4, %s2122_s4, %s2121_s3  }
  0x2b   : > { %281 = sbr.rel (%p1923_p8) target bundleno = 406 (0x196), region = 40  ;;  %s1989_s13 = sand.u32 (!%p1923_p8), 1, %s1804_s21  }
  0x2c   : > { %s1157_s20 = sshll.u32 (!%p1923_p8), %s1989_s13, 3  ;;  %s284_s26 = scalar_lea.sflag (!%p1923_p8), [#allocation6], %s1989_s13 }
  0x2d   : > { %s1993_s27 = scalar_lea.vmem (!%p1923_p8), [#allocation5], %s1157_s20 }
  0x30   : > { %1783 = dma.done.wait (%p1910_p4), %s284_s26, 128  }
  0x31   : > { %1785 = vsyncadd (%p1910_p4), %s284_s26, 4294967168 }
  0x32   : > { %1787 = dma.done.wait (%p1900_p1), [#allocation9], 4160  }
  0x33   : > { %1789 = vsyncadd (%p1900_p1), [#allocation9], 4294963136 }
  0x34   : > { %1791 = dma.done.wait (%p1900_p1), [#allocation12], 4096  }
  0x35   : > { %1793 = vsyncadd (%p1900_p1), [#allocation12], 4294963200  ;;  %v1280_v0 = vld [vmem:[#allocation8 + $0xe0] sm:$0xf]  ;;  %v1459_v1 = vld [vmem:[#allocation8 + $0xec] sm:$0xf0] }
  0x36   : > { %v1457_v2 = vld [vmem:[#allocation8 + $0xe4] sm:$0xf]  ;;  %v1281_v3 = vor.u32 %v1459_v1, %v1280_v0  ;;  %v1282_v4 = vld [vmem:[#allocation8 + $0xf0] sm:$0xf0]  ;;  %v1288_v5 = vld [vmem:[#allocation8 + $0xe8] sm:$0xf] }
  0x37   : > { %v1460_v6 = vld [vmem:[#allocation8 + $0xf4] sm:$0xf0]  ;;  %v1285_v7 = vor.u32 %v1457_v2, %v1282_v4  ;;  %v1458_v9 = vld [vmem:[#allocation8 + $0xec] sm:$0xf]  ;;  %v1290_v10 = vld [vmem:[#allocation8 + $0xf8] sm:$0xf0] }
  0x38   : > { %v1289_v8 = vor.u32 %v1460_v6, %v1288_v5  ;;  %v1264_v11 = vld [vmem:[#allocation8 + $0xc0] sm:$0xf]  ;;  %551 = vmatpush.bf16.msra.mxu0 %v1281_v3  ;;  %v1293_v12 = vor.u32 %v1458_v9, %v1290_v10  ;;  %v1455_v13 = vld [vmem:[#allocation8 + $0xcc] sm:$0xf0]  ;;  %v1453_v14 = vld [vmem:[#allocation8 + $0xc4] sm:$0xf] }
  0x39   : > { %v1266_v15 = vld [vmem:[#allocation8 + $0xd0] sm:$0xf0]  ;;  %565 = vmatpush.bf16.msra.mxu1 %v1285_v7  ;;  %v1265_v16 = vor.u32 %v1455_v13, %v1264_v11  ;;  %v1272_v18 = vld [vmem:[#allocation8 + $0xc8] sm:$0xf]  ;;  %v1456_v19 = vld [vmem:[#allocation8 + $0xd4] sm:$0xf0] }
  0x3a   : > { %579 = vmatpush.bf16.msra.mxu2 %v1289_v8  ;;  %v1269_v17 = vor.u32 %v1453_v14, %v1266_v15  ;;  %v1454_v20 = vld [vmem:[#allocation8 + $0xcc] sm:$0xf]  ;;  %593 = vmatpush.bf16.msra.mxu3 %v1293_v12  ;;  %v1273_v21 = vor.u32 %v1456_v19, %v1272_v18  ;;  %v1274_v22 = vld [vmem:[#allocation8 + $0xd8] sm:$0xf0]  ;;  %v1248_v23 = vld [vmem:[#allocation8 + $0xa0] sm:$0xf] }
  0x3b   : > { %v1451_v24 = vld [vmem:[#allocation8 + $0xac] sm:$0xf0]  ;;  %v1277_v25 = vor.u32 %v1454_v20, %v1274_v22  ;;  %v1449_v26 = vld [vmem:[#allocation8 + $0xa4] sm:$0xf]  ;;  %v1250_v27 = vld [vmem:[#allocation8 + $0xb0] sm:$0xf0] }
  0x3c   : > { %v1256_v28 = vld [vmem:[#allocation8 + $0xa8] sm:$0xf]  ;;  %552 = vmatpush.bf16.msra.mxu0 %v1265_v16  ;;  %v1249_v29 = vor.u32 %v1451_v24, %v1248_v23  ;;  %v1452_v30 = vld [vmem:[#allocation8 + $0xb4] sm:$0xf0]  ;;  %v1450_v31 = vld [vmem:[#allocation8 + $0xac] sm:$0xf]  ;;  %v1253_v33 = vor.u32 %v1449_v26, %v1250_v27 }
  0x3d   : > { %v1258_v32 = vld [vmem:[#allocation8 + $0xb8] sm:$0xf0]  ;;  %566 = vmatpush.bf16.msra.mxu1 %v1269_v17  ;;  %v1257_v34 = vor.u32 %v1452_v30, %v1256_v28  ;;  %v1232_v35 = vld [vmem:[#allocation8 + $0x80] sm:$0xf]  ;;  %v1447_v36 = vld [vmem:[#allocation8 + $0x8c] sm:$0xf0] }
  0x3e   : > { %580 = vmatpush.bf16.msra.mxu2 %v1273_v21  ;;  %v1445_v37 = vld [vmem:[#allocation8 + $0x84] sm:$0xf]  ;;  %594 = vmatpush.bf16.msra.mxu3 %v1277_v25  ;;  %v1261_v38 = vor.u32 %v1450_v31, %v1258_v32  ;;  %v1234_v39 = vld [vmem:[#allocation8 + $0x90] sm:$0xf0]  ;;  %v1240_v40 = vld [vmem:[#allocation8 + $0x88] sm:$0xf]  ;;  %v1233_v44 = vor.u32 %v1447_v36, %v1232_v35 }
  0x3f   : > { %v1448_v41 = vld [vmem:[#allocation8 + $0x94] sm:$0xf0]  ;;  %v1446_v42 = vld [vmem:[#allocation8 + $0x8c] sm:$0xf]  ;;  %v1242_v43 = vld [vmem:[#allocation8 + $0x98] sm:$0xf0]  ;;  %v1237_v45 = vor.u32 %v1445_v37, %v1234_v39 }
  0x40   : > { %553 = vmatpush.bf16.msra.mxu0 %v1249_v29  ;;  %v1241_v46 = vor.u32 %v1448_v41, %v1240_v40  ;;  %v1216_v47 = vld [vmem:[#allocation8 + $0x60] sm:$0xf]  ;;  %v1443_v48 = vld [vmem:[#allocation8 + $0x6c] sm:$0xf0]  ;;  %v1441_v49 = vld [vmem:[#allocation8 + $0x64] sm:$0xf]  ;;  %v1245_v50 = vor.u32 %v1446_v42, %v1242_v43 }
  0x41   : > { %567 = vmatpush.bf16.msra.mxu1 %v1253_v33  ;;  %v1218_v51 = vld [vmem:[#allocation8 + $0x70] sm:$0xf0]  ;;  %v1224_v52 = vld [vmem:[#allocation8 + $0x68] sm:$0xf]  ;;  %v1444_v53 = vld [vmem:[#allocation8 + $0x74] sm:$0xf0]  ;;  %v1217_v56 = vor.u32 %v1443_v48, %v1216_v47 }
  0x42   : > { %581 = vmatpush.bf16.msra.mxu2 %v1257_v34  ;;  %595 = vmatpush.bf16.msra.mxu3 %v1261_v38  ;;  %v1442_v54 = vld [vmem:[#allocation8 + $0x6c] sm:$0xf]  ;;  %v1226_v55 = vld [vmem:[#allocation8 + $0x78] sm:$0xf0]  ;;  %v1221_v57 = vor.u32 %v1441_v49, %v1218_v51  ;;  %v1225_v58 = vor.u32 %v1444_v53, %v1224_v52  ;;  %v1200_v59 = vld [vmem:[#allocation8 + $0x40] sm:$0xf] }
  0x43   : > { %v1439_v60 = vld [vmem:[#allocation8 + $0x4c] sm:$0xf0]  ;;  %v1437_v61 = vld [vmem:[#allocation8 + $0x44] sm:$0xf]  ;;  %v1229_v62 = vor.u32 %v1442_v54, %v1226_v55  ;;  %v1202_v63 = vld [vmem:[#allocation8 + $0x50] sm:$0xf0] }
  0x44   : > { %554 = vmatpush.bf16.msra.mxu0 %v1233_v44  ;;  %v1208_v0 = vld [vmem:[#allocation8 + $0x48] sm:$0xf]  ;;  %v1440_v1 = vld [vmem:[#allocation8 + $0x54] sm:$0xf0]  ;;  %v1438_v2 = vld [vmem:[#allocation8 + $0x4c] sm:$0xf]  ;;  %v1201_v4 = vor.u32 %v1439_v60, %v1200_v59  ;;  %v1205_v5 = vor.u32 %v1437_v61, %v1202_v63 }
  0x45   : > { %568 = vmatpush.bf16.msra.mxu1 %v1237_v45  ;;  %v1210_v3 = vld [vmem:[#allocation8 + $0x58] sm:$0xf0]  ;;  %v1209_v6 = vor.u32 %v1440_v1, %v1208_v0  ;;  %v1184_v7 = vld [vmem:[#allocation8 + $0x20] sm:$0xf]  ;;  %v1435_v8 = vld [vmem:[#allocation8 + $0x2c] sm:$0xf0] }
  0x46   : > { %582 = vmatpush.bf16.msra.mxu2 %v1241_v46  ;;  %596 = vmatpush.bf16.msra.mxu3 %v1245_v50  ;;  %v1433_v9 = vld [vmem:[#allocation8 + $0x24] sm:$0xf]  ;;  %v1213_v10 = vor.u32 %v1438_v2, %v1210_v3  ;;  %v1186_v11 = vld [vmem:[#allocation8 + $0x30] sm:$0xf0]  ;;  %v1192_v12 = vld [vmem:[#allocation8 + $0x28] sm:$0xf]  ;;  %v1185_v16 = vor.u32 %v1435_v8, %v1184_v7 }
  0x47   : > { %v1436_v13 = vld [vmem:[#allocation8 + $0x34] sm:$0xf0]  ;;  %v1434_v14 = vld [vmem:[#allocation8 + $0x2c] sm:$0xf]  ;;  %v1194_v15 = vld [vmem:[#allocation8 + $0x38] sm:$0xf0]  ;;  %v1189_v17 = vor.u32 %v1433_v9, %v1186_v11 }
  0x48   : > { %555 = vmatpush.bf16.msra.mxu0 %v1217_v56  ;;  %v1193_v18 = vor.u32 %v1436_v13, %v1192_v12  ;;  %v1168_v19 = vld [vmem:[#allocation8] sm:$0xf]  ;;  %v1431_v20 = vld [vmem:[#allocation8 + $0xc] sm:$0xf0]  ;;  %v1429_v21 = vld [vmem:[#allocation8 + $0x4] sm:$0xf]  ;;  %v1197_v22 = vor.u32 %v1434_v14, %v1194_v15 }
  0x49   : > { %569 = vmatpush.bf16.msra.mxu1 %v1221_v57  ;;  %v1170_v23 = vld [vmem:[#allocation8 + $0x10] sm:$0xf0]  ;;  %v1176_v24 = vld [vmem:[#allocation8 + $0x8] sm:$0xf]  ;;  %v1432_v25 = vld [vmem:[#allocation8 + $0x14] sm:$0xf0]  ;;  %v1169_v28 = vor.u32 %v1431_v20, %v1168_v19 }
  0x4a   : > { %583 = vmatpush.bf16.msra.mxu2 %v1225_v58  ;;  %597 = vmatpush.bf16.msra.mxu3 %v1229_v62  ;;  %v1430_v26 = vld [vmem:[#allocation8 + $0xc] sm:$0xf]  ;;  %v1178_v27 = vld [vmem:[#allocation8 + $0x18] sm:$0xf0]  ;;  %v1173_v29 = vor.u32 %v1429_v21, %v1170_v23  ;;  %v1177_v30 = vor.u32 %v1432_v25, %v1176_v24  ;;  %v1467_v35 = vld [vmem:[#allocation11 + $0x30] sm:$0xff]  ;;  %s1161_s2 = sshll.u32 %s1989_s13, 4 }
  0x4b   : > { %v1181_v31 = vor.u32 %v1430_v26, %v1178_v27  ;;  %v1428_v32 = vld [vmem:[%s1993_s27] sm:$0xff]  ;;  %v1465_v43 = vld [vmem:[#allocation11 + $0x20] sm:$0xff]  ;;  %v2008_v53 = vld [vmem:[#allocation10] sm:$0xf]  ;;  %s1493_s28 = sshll.u32 %s1812_s23, 4  ;;  %s329_s10 = scalar_lea.vmem [#allocation13], %s1161_s2 }
  0x4c   : > { %556 = vmatpush.bf16.msra.mxu0 %v1201_v4  ;;  %v1468_v33 = vld [vmem:[#allocation11 + $0x38] sm:$0xff]  ;;  %v1475_v36 = vld [vmem:[#allocation11 + $0x70] sm:$0xff]  ;;  %v1466_v39 = vld [vmem:[#allocation11 + $0x28] sm:$0xff]  ;;  %v377_v56 = vperm.slane %v2008_v53, 0  ;;  %v378_v60 = vperm.slane %v2008_v53, 1  ;;  %v379_v8 = vperm.slane %v2008_v53, 2  ;;  %s1026_s16 = scalar_lea.hbm %s2104_s6, %s1493_s28 }
  0x4d   : > { %570 = vmatpush.bf16.msra.mxu1 %v1205_v5  ;;  %v1476_v34 = vld [vmem:[#allocation11 + $0x78] sm:$0xff]  ;;  %v1474_v40 = vld [vmem:[#allocation11 + $0x68] sm:$0xff]  ;;  %v1483_v41 = vld [vmem:[#allocation11 + $0xb0] sm:$0xff]  ;;  %s1027_s14 = sshll.u32 %s329_s10, 4  ;;  %s1029_s19 = sshll.u32 %s1026_s16, 4  ;;  %s1028_s14 = int_to_ptr.vmem [resolvable:$true] %s1027_s14  ;;  %s1030_s19 = int_to_ptr.hbm [resolvable:$true] %s1029_s19 }
  0x4e   : > { %584 = vmatpush.bf16.msra.mxu2 %v1209_v6  ;;  %598 = vmatpush.bf16.msra.mxu3 %v1213_v10  ;;  %v1484_v37 = vld [vmem:[#allocation11 + $0xb8] sm:$0xff]  ;;  %v1491_v42 = vld [vmem:[#allocation11 + $0xf0] sm:$0xff]  ;;  %v1473_v44 = vld [vmem:[#allocation11 + $0x60] sm:$0xff]  ;;  %v380_v10 = vperm.slane %v2008_v53, 3  ;;  %s1015_s23 = scalar_lea.sflag [#allocation7], %s1989_s13  ;;  %s1744_s8 = sshra.s32 %s1030_s19, 4  ;;  %s1745_s8 = int_to_ptr.hbm [resolvable:$true] %s1744_s8 }
  0x4f   : > { %v1492_v38 = vld [vmem:[#allocation11 + $0xf8] sm:$0xff]  ;;  %v1482_v45 = vld [vmem:[#allocation11 + $0xa8] sm:$0xff]  ;;  %v1481_v49 = vld [vmem:[#allocation11 + $0xa0] sm:$0xff]  ;;  %s1746_s9 = scalar_lea.hbm %s1745_s8, 16  ;;  %s1750_s20 = scalar_lea.hbm %s2104_s6, 32 }
  0x50   : > { %557 = vmatpush.bf16.msra.mxu0 %v1185_v16  ;;  %v1490_v46 = vld [vmem:[#allocation11 + $0xe8] sm:$0xff]  ;;  %v1464_v47 = vld [vmem:[#allocation11 + $0x18] sm:$0xff]  ;;  %v1489_v50 = vld [vmem:[#allocation11 + $0xe0] sm:$0xff]  ;;  %p1747_p1 = scmp.ne.s32.totalorder %s1745_s8, %s1746_s9  ;;  %p1751_p10 = scmp.lt.s32.totalorder %s1745_s8, %s2104_s6 }
  0x51   : > { %571 = vmatpush.bf16.msra.mxu1 %v1189_v17  ;;  %v1472_v48 = vld [vmem:[#allocation11 + $0x58] sm:$0xff]  ;;  %v1463_v51 = vld [vmem:[#allocation11 + $0x10] sm:$0xff]  ;;  %v1462_v57 = vld [vmem:[#allocation11 + $0x8] sm:$0xff]  ;;  %p1752_p12 = scmp.lt.s32.totalorder %s1750_s20, %s1746_s9 }
  0x52   : > { %585 = vmatpush.bf16.msra.mxu2 %v1193_v18  ;;  %599 = vmatpush.bf16.msra.mxu3 %v1197_v22  ;;  %v1471_v52 = vld [vmem:[#allocation11 + $0x50] sm:$0xff]  ;;  %v1480_v54 = vld [vmem:[#allocation11 + $0x98] sm:$0xff]  ;;  %v1470_v58 = vld [vmem:[#allocation11 + $0x48] sm:$0xff]  ;;  %p1748_p4 = pnand %p1747_p1, %p1958_p3 }
  0x53   : > { %v1488_v55 = vld [vmem:[#allocation11 + $0xd8] sm:$0xff]  ;;  %v1479_v59 = vld [vmem:[#allocation11 + $0x90] sm:$0xff]  ;;  %v1461_v62 = vld [vmem:[#allocation11] sm:$0xff]  ;;  %p1753_p13 = por %p1752_p12, %p1751_p10 }
  0x54   : > { %558 = vmatpush.bf16.msra.mxu0 %v1169_v28  ;;  %v1487_v61 = vld [vmem:[#allocation11 + $0xd0] sm:$0xff]  ;;  %v1469_v63 = vld [vmem:[#allocation11 + $0x40] sm:$0xff]  ;;  %v1478_v3 = vld [vmem:[#allocation11 + $0x88] sm:$0xff]  ;;  %p1749_p8 = pneg %p1748_p4 }
  0x55   : > { %572 = vmatpush.bf16.msra.mxu1 %v1173_v29  ;;  %v1486_v4 = vld [vmem:[#allocation11 + $0xc8] sm:$0xff]  ;;  %v1477_v12 = vld [vmem:[#allocation11 + $0x80] sm:$0xff] }
  0x56   : > { %586 = vmatpush.bf16.msra.mxu2 %v1177_v30  ;;  %600 = vmatpush.bf16.msra.mxu3 %v1181_v31  ;;  %v1485_v13 = vld [vmem:[#allocation11 + $0xc0] sm:$0xff]  ;;  %p1754_p0 = pnand %p1753_p13, %p1749_p8 }
  0x57   : > { %559 = vmatmul.bf16.vlgmr.msra.gmra.mxu0 %v1428_v32 }
  0x58   : > { %573 = vmatmul.bf16.vlgmr.msra.gmra.mxu1 %v1428_v32  ;;  %941 = vmatpush.bf16.msrb.mxu0 %v1468_v33 }
  0x59   : > { %587 = vmatmul.bf16.vlgmr.msra.gmra.mxu2 %v1428_v32  ;;  %601 = vmatmul.bf16.vlgmr.msra.gmra.mxu3 %v1428_v32 }
  0x5a   : > { %955 = vmatpush.bf16.msrb.mxu1 %v1476_v34  ;;  %969 = vmatpush.bf16.msrb.mxu2 %v1484_v37 }
  0x5b   : > { %983 = vmatpush.bf16.msrb.mxu3 %v1492_v38 }
  0x5c   : > { %942 = vmatpush.bf16.msrb.mxu0 %v1467_v35 }
  0x5e   : > { %956 = vmatpush.bf16.msrb.mxu1 %v1475_v36  ;;  %970 = vmatpush.bf16.msrb.mxu2 %v1483_v41 }
  0x5f   : > { %984 = vmatpush.bf16.msrb.mxu3 %v1491_v42 }
  0x60   : > { %943 = vmatpush.bf16.msrb.mxu0 %v1466_v39 }
  0x62   : > { %957 = vmatpush.bf16.msrb.mxu1 %v1474_v40  ;;  %971 = vmatpush.bf16.msrb.mxu2 %v1482_v45 }
  0x63   : > { %985 = vmatpush.bf16.msrb.mxu3 %v1490_v46 }
  0x64   : > { %944 = vmatpush.bf16.msrb.mxu0 %v1465_v43 }
  0x66   : > { %958 = vmatpush.bf16.msrb.mxu1 %v1473_v44  ;;  %972 = vmatpush.bf16.msrb.mxu2 %v1481_v49 }
  0x67   : > { %986 = vmatpush.bf16.msrb.mxu3 %v1489_v50 }
  0x68   : > { %945 = vmatpush.bf16.msrb.mxu0 %v1464_v47 }
  0x6a   : > { %959 = vmatpush.bf16.msrb.mxu1 %v1472_v48  ;;  %973 = vmatpush.bf16.msrb.mxu2 %v1480_v54 }
  0x6b   : > { %987 = vmatpush.bf16.msrb.mxu3 %v1488_v55 }
  0x6c   : > { %946 = vmatpush.bf16.msrb.mxu0 %v1463_v51 }
  0x6e   : > { %960 = vmatpush.bf16.msrb.mxu1 %v1471_v52  ;;  %974 = vmatpush.bf16.msrb.mxu2 %v1479_v59 }
  0x6f   : > { %988 = vmatpush.bf16.msrb.mxu3 %v1487_v61 }
  0x70   : > { %947 = vmatpush.bf16.msrb.mxu0 %v1462_v57 }
  0x72   : > { %961 = vmatpush.bf16.msrb.mxu1 %v1470_v58  ;;  %975 = vmatpush.bf16.msrb.mxu2 %v1478_v3 }
  0x73   : > { %989 = vmatpush.bf16.msrb.mxu3 %v1486_v4 }
  0x74   : > { %948 = vmatpush.bf16.msrb.mxu0 %v1461_v62 }
  0x76   : > { %962 = vmatpush.bf16.msrb.mxu1 %v1469_v63  ;;  %976 = vmatpush.bf16.msrb.mxu2 %v1477_v12 }
  0x77   : > { %990 = vmatpush.bf16.msrb.mxu3 %v1485_v13 }
  0xd4   : > { %v560_v0 = vpop.f32.mrf.mxu0 }
  0xd5   : > { %v2012_v1 = vadd.f32 %v560_v0, %v377_v56  ;;  %v574_v2 = vpop.f32.mrf.mxu1 }
  0xd6   : > { %v2014_v5 = vadd.f32 %v574_v2, %v378_v60 }
  0xd7   : > { %v607_v6 = vmul.f32 %v2012_v1, %v2012_v1 }
  0xd8   : > { %v608_v7 = vmul.f32 %v2014_v5, %v2014_v5 }
  0xd9   : > { %v615_v9 = vmul.f32 %v607_v6, %v2012_v1 }
  0xda   : > { %v616_v11 = vmul.f32 %v608_v7, %v2014_v5 }
  0xdb   : > { %v623_v14 = vmul.f32 0.044715, %v615_v9 }
  0xdc   : > { %v588_v15 = vpop.f32.mrf.mxu2  ;;  %v624_v16 = vmul.f32 0.044715, %v616_v11  ;;  %v602_v18 = vpop.f32.mrf.mxu3 }
  0xdd   : > { %v2024_v17 = vadd.f32 %v588_v15, %v379_v8  ;;  %v562_v19 = vpop.f32.mrf.mxu0  ;;  %v631_v20 = vadd.f32 %v623_v14, %v2012_v1  ;;  %v2027_v21 = vadd.f32 %v602_v18, %v380_v10  ;;  %v576_v23 = vpop.f32.mrf.mxu1 }
  0xde   : > { %v2029_v22 = vadd.f32 %v562_v19, %v377_v56  ;;  %v632_v24 = vadd.f32 %v624_v16, %v2014_v5  ;;  %v2034_v26 = vadd.f32 %v576_v23, %v378_v60 }
  0xdf   : > { %v609_v25 = vmul.f32 %v2024_v17, %v2024_v17  ;;  %v610_v27 = vmul.f32 %v2027_v21, %v2027_v21  ;;  %v639_v29 = vmul.f32 0.7978846, %v631_v20 }
  0xe0   : > { %v611_v28 = vmul.f32 %v2029_v22, %v2029_v22  ;;  %v612_v31 = vmul.f32 %v2034_v26, %v2034_v26  ;;  %v640_v32 = vmul.f32 0.7978846, %v632_v24 }
  0xe1   : > { %v617_v30 = vmul.f32 %v609_v25, %v2024_v17  ;;  %v618_v33 = vmul.f32 %v610_v27, %v2027_v21  ;;  %1594 = vtanh.f32 %v639_v29 }
  0xe2   : > { %v619_v34 = vmul.f32 %v611_v28, %v2029_v22  ;;  %v620_v36 = vmul.f32 %v612_v31, %v2034_v26  ;;  %1596 = vtanh.f32 %v640_v32 }
  0xe3   : > { %v625_v35 = vmul.f32 0.044715, %v617_v30  ;;  %v626_v37 = vmul.f32 0.044715, %v618_v33 }
  0xe4   : > { %v627_v38 = vmul.f32 0.044715, %v619_v34  ;;  %v590_v39 = vpop.f32.mrf.mxu2  ;;  %v628_v41 = vmul.f32 0.044715, %v620_v36  ;;  %v604_v43 = vpop.f32.mrf.mxu3 }
  0xe5   : > { %v633_v40 = vadd.f32 %v625_v35, %v2024_v17  ;;  %v591_v42 = vadd.f32 %v590_v39, %v379_v8  ;;  %v634_v44 = vadd.f32 %v626_v37, %v2027_v21  ;;  %v605_v46 = vadd.f32 %v604_v43, %v380_v10 }
  0xe6   : > { %v635_v45 = vadd.f32 %v627_v38, %v2029_v22  ;;  %v636_v48 = vadd.f32 %v628_v41, %v2034_v26 }
  0xe7   : > { %v641_v47 = vmul.f32 0.7978846, %v633_v40  ;;  %v613_v49 = vmul.f32 %v591_v42, %v591_v42  ;;  %v642_v50 = vmul.f32 0.7978846, %v634_v44  ;;  %v614_v52 = vmul.f32 %v605_v46, %v605_v46  ;;  %v1595_v56 = vpop.eup %1594 }
  0xe8   : > { %v643_v51 = vmul.f32 0.7978846, %v635_v45  ;;  %v644_v53 = vmul.f32 0.7978846, %v636_v48  ;;  %v1597_v58 = vpop.eup %1596  ;;  %v655_v62 = vadd.f32 1.0, %v1595_v56 }
  0xe9   : > { %1598 = vtanh.f32 %v641_v47  ;;  %v621_v54 = vmul.f32 %v613_v49, %v591_v42  ;;  %v622_v55 = vmul.f32 %v614_v52, %v605_v46  ;;  %v656_v2 = vadd.f32 1.0, %v1597_v58 }
  0xea   : > { %1600 = vtanh.f32 %v642_v50  ;;  %v663_v9 = vmul.f32 0.5, %v655_v62 }
  0xeb   : > { %1602 = vtanh.f32 %v643_v51  ;;  %v629_v57 = vmul.f32 0.044715, %v621_v54  ;;  %v630_v59 = vmul.f32 0.044715, %v622_v55  ;;  %v664_v11 = vmul.f32 0.5, %v656_v2 }
  0xec   : > { %1604 = vtanh.f32 %v644_v53  ;;  %v671_v16 = vmul.f32 %v663_v9, %v2012_v1 }
  0xed   : > { %v637_v60 = vadd.f32 %v629_v57, %v591_v42  ;;  %v638_v61 = vadd.f32 %v630_v59, %v605_v46  ;;  %v672_v20 = vmul.f32 %v664_v11, %v2014_v5 }
  0xef   : > { %v1599_v63 = vpop.eup %1598  ;;  %v645_v0 = vmul.f32 0.7978846, %v637_v60  ;;  %v646_v4 = vmul.f32 0.7978846, %v638_v61 }
  0xf0   : > { %v1601_v3 = vpop.eup %1600  ;;  %v657_v13 = vadd.f32 1.0, %v1599_v63 }
  0xf1   : > { %v1603_v6 = vpop.eup %1602  ;;  %1606 = vtanh.f32 %v645_v0  ;;  %v658_v15 = vadd.f32 1.0, %v1601_v3 }
  0xf2   : > { %v1605_v7 = vpop.eup %1604  ;;  %1608 = vtanh.f32 %v646_v4  ;;  %v659_v8 = vadd.f32 1.0, %v1603_v6  ;;  %v665_v28 = vmul.f32 0.5, %v657_v13 }
  0xf3   : > { %v660_v10 = vadd.f32 1.0, %v1605_v7  ;;  %v666_v31 = vmul.f32 0.5, %v658_v15 }
  0xf4   : > { %v667_v12 = vmul.f32 0.5, %v659_v8  ;;  %v673_v1 = vmul.f32 %v665_v28, %v2024_v17  ;;  %v1593_v17 = vld [vmem:[%s2103_s5] ss:$0 sm:$0xff] }
  0xf5   : > { %v668_v14 = vmul.f32 0.5, %v660_v10  ;;  %v674_v5 = vmul.f32 %v666_v31, %v2027_v21 }
  0xf6   : > { %v675_v18 = vmul.f32 %v667_v12, %v2029_v22 }
  0xf7   : > { %v1607_v19 = vpop.eup %1606  ;;  %v676_v23 = vmul.f32 %v668_v14, %v2034_v26 }
  0xf8   : > { %v1609_v24 = vpop.eup %1608  ;;  %v681_v25 = vpack.c.bf16 %v675_v18, %v671_v16  ;;  %v661_v27 = vadd.f32 1.0, %v1607_v19 }
  0xf9   : > { %v682_v29 = vpack.c.bf16 %v676_v23, %v672_v20  ;;  %v662_v30 = vadd.f32 1.0, %v1609_v24 }
  0xfa   : > { %949 = vmatmul.bf16.vlgmr.msrb.gmra.mxu0 %v681_v25  ;;  %v669_v32 = vmul.f32 0.5, %v661_v27 }
  0xfb   : > { %963 = vmatmul.bf16.vlgmr.msrb.gmra.mxu1 %v682_v29  ;;  %v670_v33 = vmul.f32 0.5, %v662_v30 }
  0xfc   : > { %v677_v22 = vmul.f32 %v669_v32, %v591_v42 }
  0xfd   : > { %v678_v34 = vmul.f32 %v670_v33, %v605_v46 }
  0xfe   : > { %v683_v26 = vpack.c.bf16 %v677_v22, %v673_v1 }
  0xff   : > { %v684_v35 = vpack.c.bf16 %v678_v34, %v674_v5 }
 0x100   : > { %977 = vmatmul.bf16.vlgmr.msrb.gmra.mxu2 %v683_v26 }
 0x101   : > { %991 = vmatmul.bf16.vlgmr.msrb.gmra.mxu3 %v684_v35 }
 0x177   : > { %v950_v36 = vpop.f32.mrf.mxu0 }
 0x178   : > { %v964_v37 = vpop.f32.mrf.mxu1 }
 0x179   : > { %v965_v38 = vadd.f32 %v964_v37, %v950_v36 }
 0x17f   : > { %v952_v43 = vpop.f32.mrf.mxu0 }
 0x180   : > { %v966_v21 = vpop.f32.mrf.mxu1 }
 0x181   : > { %v967_v45 = vadd.f32 %v966_v21, %v952_v43 }
 0x183   : > { %v978_v39 = vpop.f32.mrf.mxu2 }
 0x184   : > { %v979_v40 = vadd.f32 %v978_v39, %v965_v38  ;;  %v992_v41 = vpop.f32.mrf.mxu3 }
 0x186   : > { %v993_v42 = vadd.f32 %v992_v41, %v979_v40 }
 0x188   : > { %v1010_v44 = vadd.f32 %v1593_v17, %v993_v42 }
 0x18a   : > { %1012 = vst [vmem:[%s329_s10] sm:$0xff] %v1010_v44 }
 0x18b   : > { %v980_v46 = vpop.f32.mrf.mxu2 }
 0x18c   : > { %v981_v47 = vadd.f32 %v980_v46, %v967_v45  ;;  %v994_v48 = vpop.f32.mrf.mxu3 }
 0x18e   : > { %v995_v49 = vadd.f32 %v994_v48, %v981_v47 }
 0x190   : > { %v1011_v50 = vadd.f32 %v1593_v17, %v995_v49 }
 0x192   : > { %1013 = vst [vmem:[%s329_s10 + $0x8] sm:$0xff] %v1011_v50 }
 0x193   : > { %1757 = shalt.err (!%p1754_p0)
}
 0x194   : > { %s1829_s13 = smov 128   ;;  %s1830_s2 = smov 8  }
 0x195   : > { %1508 = dma.vmem_to_hbm [thread:$0]  (%p1958_p3), %s1028_s14, 256, %s1030_s19, %s1015_s23, %s1829_s13, %s1829_s13, %s1830_s2  }
 0x196 PF: > { %s1044_s3 = sand.u32 1, %s1800_s0   ;;  %p1525_p5 = pnand %p1152_p11, %p1915_p6 }
 0x197   : > { %s1045_s4 = scalar_lea.sflag [#allocation7], %s1044_s3 }
 0x198   : > { %p1526_p7 = pneg %p1525_p5 }
 0x19a   : > { %1795 = dma.done.wait (%p1526_p7), %s1045_s4, 256  }
 0x19b   : > { %1797 = vsyncadd (%p1526_p7), %s1045_s4, 4294967040  ;;  %s25_s25 = sadd.s32 1, %s1820_s25   ;;  %s2123_s0 = smov %s1804_s21 }
 0x19c   : > { %p22_p9 = scmp.ge.s32.totalorder %s25_s25, 4   ;;  %s2124_s21 = smov %s1808_s22 }
 0x19d   : > { %s2125_s22 = smov %s1974_s29  ;;  %s2126_s23 = smov %s1816_s24 }
 0x19e   : > { %s2127_s24 = smov %s2129_s18  ;;  %24 = sbr.rel (!%p22_p9) target bundleno = 12 (0xc), region = 108 }
 0x1a3   :  { %1051 = vsyncpa [#allocation6], 1 }
 0x1a4   :  { %1053 = vsyncpa [#allocation6 + $0x1], 1 }
 0x1a5   :  { %1054 = vsyncpa [#allocation9], 1 }
 0x1a6   :  { %1055 = vsyncpa [#allocation12], 1 }
 0x1a7   :  { %1056 = vsyncpa [#allocation7], 1 }
 0x1a8   :  { %1058 = vsyncpa [#allocation7 + $0x1], 1 }

</bundles_post_ra>
